<compile_context>
chip_gen: v5e
topology: v5e:2x2
jax: 0.10.0
libtpu: 0.0.40
codegen_flags: <defaults>
</compile_context>

<pallas_src>
import functools

import numpy as np
import jax
import jax.numpy as jnp
from jax.experimental import pallas as pl
from jax.experimental.pallas import tpu as pltpu

NEG_SLOPE = 0.01          # F.leaky_relu default
_NEG_BIG = -1e30          # finite "-inf" sentinel (avoids inf-inf NaNs)

_VMEM_BUDGET = 32 * 1024 * 1024   # per-step footprint target (safe on v7x 64 MiB VMEM)
_VMEM_LIMIT = 48 * 1024 * 1024    # scoped VMEM limit handed to Mosaic


def _round_up(x, m):
    return ((x + m - 1) // m) * m


# ---------------------------------------------------------------------------
# Tile / padding plan (shared by gat_layer and prepare_adjacency so a caller can
# cache the prepared adjacency across calls).
# ---------------------------------------------------------------------------
def _plan(N, out_dim, *, td=256, ts=1024, use_bf16=True):
    """Returns (td, ts, n_pad, out_dim_pad).  td/ts must be 128 * power-of-two."""
    out_dim_pad = _round_up(out_dim, 128)
    cdb = 2 if use_bf16 else 4
    n128 = _round_up(N, 128)

    # Shrink for small graphs (halving keeps td | ts or ts | td, so one n_pad works).
    while ts > 128 and ts > n128:
        ts //= 2
    while td > 128 and td > n128:
        td //= 2

    # VMEM-aware shrink: double-buffered inputs/outputs + resident scratch.
    def footprint(td_, ts_):
        return (2 * td_ * ts_                      # adj tile, int8
                + 2 * ts_ * out_dim_pad * cdb      # z_src tile
                + 2 * td_ * out_dim_pad * 4        # out tile
                + td_ * out_dim_pad * 4            # acc scratch
                + 16 * (td_ + ts_))                # s_dst / s_src / m_row / l / m
    while ts > 128 and footprint(td, ts) > _VMEM_BUDGET:
        ts //= 2
    while td > 128 and footprint(td, ts) > _VMEM_BUDGET:
        td //= 2

    n_pad = _round_up(N, max(td, ts))
    return td, ts, n_pad, out_dim_pad


def prepare_adjacency(adj, N, out_dim, *, td=256, ts=1024, use_bf16=True):
    """Hoistable / cacheable preprocessing: (dst, src)-major int8 padded adjacency."""
    _, _, n_pad, _ = _plan(N, out_dim, td=td, ts=ts, use_bf16=use_bf16)
    a = (adj.T != 0).astype(jnp.int8)
    return jnp.pad(a, ((0, n_pad - N), (0, n_pad - N)))


# ---------------------------------------------------------------------------
# Kernel 1: node-feature projection + attention-logit scalars.
#   z      = h @ W^T                       (tile_n, out_dim_pad), compute dtype
#   s_dst  = sum(z * a_dst, lane axis)     (tile_n, 1) f32
#   s_src  = sum(z * a_src, lane axis)^T   (1, tile_n) f32, lane-major for kernel 2
# ---------------------------------------------------------------------------
def project_kernel(h_ref, wt_ref, a_src_ref, a_dst_ref, z_ref, sdst_ref, ssrc_ref):
    z32 = jnp.dot(h_ref[...], wt_ref[...], preferred_element_type=jnp.float32)
    z_ref[...] = z32.astype(z_ref.dtype)
    sdst_ref[...] = jnp.sum(z32 * a_dst_ref[...], axis=-1, keepdims=True)
    ssrc_ref[...] = jnp.sum(z32 * a_src_ref[...], axis=-1, keepdims=True).T


# ---------------------------------------------------------------------------
# Kernel 2: masked softmax attention + aggregation in (dst, src) layout.
# grid = (dst_tiles [parallel], src_tiles [arbitrary]); accumulators in VMEM scratch.
#   fixed_stab=True : fixed stabilizer m_row (precomputed) -> no running max, no
#                     correction rescales, no p-mask select (masked exp underflows to 0).
#   fixed_stab=False: exact flash-style online softmax (fallback path).
# ---------------------------------------------------------------------------
def gat_attn_kernel(sdst_ref, ssrc_ref, mrow_ref, zsrc_ref, adj_ref, out_ref,
                    l_scr, acc_scr, m_scr, *, fixed_stab, approx_recip):
    j = pl.program_id(1)

    @pl.when(j == 0)
    def _init():
        l_scr[...] = jnp.zeros_like(l_scr)
        acc_scr[...] = jnp.zeros_like(acc_scr)
        if not fixed_stab:
            m_scr[...] = jnp.full(m_scr.shape, _NEG_BIG, dtype=jnp.float32)

    # (td, ts) logits from precomputed scalars: one broadcast add, no MXU, no transpose.
    e = sdst_ref[...] + ssrc_ref[...]
    e = jnp.maximum(e, NEG_SLOPE * e)                 # leaky_relu (slope < 1)
    mask = adj_ref[...] != 0                          # int8 compare, no f32 cast
    e = jnp.where(mask, e, jnp.float32(_NEG_BIG))

    z_src = zsrc_ref[...]                             # (ts, D) compute dtype

    if fixed_stab:
        # m_row is a finite upper bound on every edge logit of this dst row, so
        # exp(e - m) <= 1 and masked entries (-1e30) underflow exactly to 0.
        p = jnp.exp(e - mrow_ref[...])
        l_scr[...] += jnp.sum(p, axis=-1, keepdims=True)
        acc_scr[...] += jnp.dot(p.astype(z_src.dtype), z_src,
                                preferred_element_type=jnp.float32)
    else:
        m_prev = m_scr[...]
        m_new = jnp.maximum(m_prev, jnp.max(e, axis=-1, keepdims=True))
        p = jnp.exp(e - m_new)
        p = jnp.where(mask, p, 0.0)                   # all-masked tile row -> exp(0)=1 trap
        corr = jnp.exp(m_prev - m_new)
        l_scr[...] = corr * l_scr[...] + jnp.sum(p, axis=-1, keepdims=True)
        acc_scr[...] = corr * acc_scr[...] + jnp.dot(p.astype(z_src.dtype), z_src,
                                                     preferred_element_type=jnp.float32)
        m_scr[...] = m_new

    @pl.when(j == pl.num_programs(1) - 1)
    def _finalize():
        inv = pl.reciprocal(l_scr[...], approx=approx_recip)  # EUP, (td, 1)
        out_ref[...] = (acc_scr[...] * inv).astype(out_ref.dtype)


# ---------------------------------------------------------------------------
# Wrapper
# ---------------------------------------------------------------------------
def gat_layer(h, fc_weight, attn_weight, adj, *,
              use_bf16=True, fixed_stabilizer=True, approx_recip=None,
              adj_prepared=False, td=256, ts=1024):
    """h: (N, in_dim); fc_weight: (out_dim, in_dim); attn_weight: (1, 2*out_dim);
    adj: (N, N) with adj[u, v] != 0 for edge u -> v, OR the output of
    prepare_adjacency(...) if adj_prepared=True.  Returns (N, out_dim) f32.

    Note: a destination node with zero in-edges yields NaN (0 * inf), matching the
    dense reference; supply self-loops if isolated nodes are possible."""
    N, in_dim = h.shape
    out_dim = fc_weight.shape[0]
    cd = jnp.bfloat16 if use_bf16 else jnp.float32      # MXU operand dtype
    if approx_recip is None:
        approx_recip = use_bf16

    td, ts, n_pad, out_dim_pad = _plan(N, out_dim, td=td, ts=ts, use_bf16=use_bf16)
    in_dim_pad = _round_up(in_dim, 128)                  # lane-dense contraction dim

    # Padded / laid-out operands (zero padding is exact and sliced off afterwards).
    h_p = jnp.pad(h.astype(cd), ((0, n_pad - N), (0, in_dim_pad - in_dim)))
    wt_p = jnp.pad(fc_weight.T.astype(cd),
                   ((0, in_dim_pad - in_dim), (0, out_dim_pad - out_dim)))
    a_src_row = jnp.pad(attn_weight[:1, :out_dim].astype(jnp.float32),
                        ((0, 0), (0, out_dim_pad - out_dim)))
    a_dst_row = jnp.pad(attn_weight[:1, out_dim:].astype(jnp.float32),
                        ((0, 0), (0, out_dim_pad - out_dim)))

    if adj_prepared:
        adj_t = adj
        assert adj_t.shape == (n_pad, n_pad) and adj_t.dtype == jnp.int8, \
            "prepared adjacency does not match the tile plan"
    else:
        adj_t = jnp.pad((adj.T != 0).astype(jnp.int8),
                        ((0, n_pad - N), (0, n_pad - N)))

    # ---- kernel 1: projection + attention-logit scalars -----------------------
    z, s_dst, s_src = pl.pallas_call(
        project_kernel,
        out_shape=(jax.ShapeDtypeStruct((n_pad, out_dim_pad), cd),
                   jax.ShapeDtypeStruct((n_pad, 1), jnp.float32),
                   jax.ShapeDtypeStruct((1, n_pad), jnp.float32)),
        grid=(n_pad // td,),
        in_specs=[pl.BlockSpec((td, in_dim_pad), lambda i: (i, 0)),
                  pl.BlockSpec((in_dim_pad, out_dim_pad), lambda i: (0, 0)),
                  pl.BlockSpec((1, out_dim_pad), lambda i: (0, 0)),
                  pl.BlockSpec((1, out_dim_pad), lambda i: (0, 0))],
        out_specs=(pl.BlockSpec((td, out_dim_pad), lambda i: (i, 0)),
                   pl.BlockSpec((td, 1), lambda i: (i, 0)),
                   pl.BlockSpec((1, td), lambda i: (0, i))),
        compiler_params=pltpu.CompilerParams(
            dimension_semantics=("parallel",),
            vmem_limit_bytes=_VMEM_LIMIT),
    )(h_p, wt_p, a_src_row, a_dst_row)

    # Fixed softmax stabilizer: finite per-dst upper bound on the edge logits.
    # O(N) XLA work, computed once per call (cheap; only real nodes enter the max).
    s_max = jnp.max(s_src[0, :N])
    m_col = s_dst + s_max
    m_col = jnp.maximum(m_col, NEG_SLOPE * m_col)        # leaky_relu, monotone bound

    # ---- kernel 2: masked-softmax attention + aggregation ---------------------
    kernel = functools.partial(gat_attn_kernel,
                               fixed_stab=fixed_stabilizer,
                               approx_recip=approx_recip)
    out_p = pl.pallas_call(
        kernel,
        out_shape=jax.ShapeDtypeStruct((n_pad, out_dim_pad), jnp.float32),
        grid=(n_pad // td, n_pad // ts),
        in_specs=[
            pl.BlockSpec((td, 1), lambda i, j: (i, 0)),            # s_dst column
            pl.BlockSpec((1, ts), lambda i, j: (0, j)),            # s_src row (lane-major)
            pl.BlockSpec((td, 1), lambda i, j: (i, 0)),            # m_row (fixed stabilizer)
            pl.BlockSpec((ts, out_dim_pad), lambda i, j: (j, 0)),  # z (src view)
            pl.BlockSpec((td, ts), lambda i, j: (i, j)),           # adj (dst, src) int8
        ],
        out_specs=pl.BlockSpec((td, out_dim_pad), lambda i, j: (i, 0)),
        scratch_shapes=[pltpu.VMEM((td, 1), jnp.float32),            # running denom
                        pltpu.VMEM((td, out_dim_pad), jnp.float32),  # running numerator
                        pltpu.VMEM((td, 1), jnp.float32)],           # running max (online)
        compiler_params=pltpu.CompilerParams(
            dimension_semantics=("parallel", "arbitrary"),
            vmem_limit_bytes=_VMEM_LIMIT),
    )(s_dst, s_src, m_col, z, adj_t)

    return out_p[:N, :out_dim]


# ---------------------------------------------------------------------------
# Plain-JAX reference (matches the PyTorch/DGL semantics), all f32.
# ---------------------------------------------------------------------------
def gat_layer_ref(h, fc_weight, attn_weight, adj):
    out_dim = fc_weight.shape[0]
    z = h @ fc_weight.T
    a_src = attn_weight[0, :out_dim]
    a_dst = attn_weight[0, out_dim:]
    e = (z @ a_src)[:, None] + (z @ a_dst)[None, :]
    e = jnp.where(e > 0, e, NEG_SLOPE * e)
    mask = adj > 0
    e = jnp.where(mask, e, -jnp.inf)
    p = jnp.exp(e - jnp.max(e, axis=0, keepdims=True))
    p = jnp.where(mask, p, 0.0)
    alpha = p / jnp.sum(p, axis=0, keepdims=True)
    return alpha.T @ z


if __name__ == "__main__":
    key = jax.random.PRNGKey(0)

    for case_idx, (N, in_dim, out_dim) in enumerate([(8, 16, 32), (200, 24, 48)]):
        k = jax.random.fold_in(key, case_idx)
        k_h, k_w, k_a, k_adj = jax.random.split(k, 4)

        h = jax.random.normal(k_h, (N, in_dim), dtype=jnp.float32)

        # nn.Linear default init: U(-1/sqrt(fan_in), 1/sqrt(fan_in)), bias=False
        fc_bound = 1.0 / np.sqrt(in_dim)
        fc_weight = jax.random.uniform(
            k_w, (out_dim, in_dim), dtype=jnp.float32, minval=-fc_bound, maxval=fc_bound)
        attn_bound = 1.0 / np.sqrt(2 * out_dim)
        attn_weight = jax.random.uniform(
            k_a, (1, 2 * out_dim), dtype=jnp.float32, minval=-attn_bound, maxval=attn_bound)

        # Deterministic random graph with self-loops (every node has >=1 in-edge,
        # matching DGL's assumption that reduce_func runs for every node).
        adj = (jax.random.uniform(k_adj, (N, N)) < 0.4).astype(jnp.float32)
        adj = jnp.maximum(adj, jnp.eye(N, dtype=jnp.float32))

        ref = gat_layer_ref(h, fc_weight, attn_weight, adj)

        # Exact path: f32 MXU operands, online softmax, exact reciprocal.
        out_exact = jax.block_until_ready(
            gat_layer(h, fc_weight, attn_weight, adj,
                      use_bf16=False, fixed_stabilizer=False, approx_recip=False))
        np.testing.assert_allclose(np.asarray(out_exact), np.asarray(ref),
                                   rtol=1e-4, atol=1e-5)

        # Fast path: bf16 MXU operands, fixed-stabilizer softmax, approx EUP reciprocal,
        # pre-prepared (cached) adjacency — looser tolerance.
        adj_p = prepare_adjacency(adj, N, out_dim, use_bf16=True)
        out_fast = jax.block_until_ready(
            gat_layer(h, fc_weight, attn_weight, adj_p, adj_prepared=True,
                      use_bf16=True, fixed_stabilizer=True))
        np.testing.assert_allclose(np.asarray(out_fast), np.asarray(ref),
                                   rtol=3e-2, atol=3e-2)

    print("KERNEL_OK")
</pallas_src>

<mosaic_0001>
module attributes {stable_mosaic.version = 11 : i64} {
  func.func @project_kernel(%arg0: i32, %arg1: memref<128x128xf32, #tpu.memory_space<vmem>>, %arg2: memref<128x128xf32, #tpu.memory_space<vmem>>, %arg3: memref<1x128xf32, #tpu.memory_space<vmem>>, %arg4: memref<1x128xf32, #tpu.memory_space<vmem>>, %arg5: memref<128x128xf32, #tpu.memory_space<vmem>>, %arg6: memref<128x1xf32, #tpu.memory_space<vmem>>, %arg7: memref<1x128xf32, #tpu.memory_space<vmem>>) attributes {dimension_semantics = [#tpu.dimension_semantics<parallel>], iteration_bounds = array<i64: 1>, scalar_prefetch = 0 : i64, scratch_operands = 0 : i64, tpu.core_type = #tpu.core_type<tc>, window_params = [{transform_indices = @transform_0, window_bounds = array<i64: 128, 128>}, {pipeline_mode = #tpu.pipeline_mode<synchronous>, transform_indices = @transform_1, window_bounds = array<i64: 128, 128>}, {pipeline_mode = #tpu.pipeline_mode<synchronous>, transform_indices = @transform_2, window_bounds = array<i64: 1, 128>}, {pipeline_mode = #tpu.pipeline_mode<synchronous>, transform_indices = @transform_3, window_bounds = array<i64: 1, 128>}, {transform_indices = @transform_4, window_bounds = array<i64: 128, 128>}, {transform_indices = @transform_5, window_bounds = array<i64: 128, 1>}, {transform_indices = @transform_6, window_bounds = array<i64: 1, 128>}]} {
    %c0 = arith.constant 0 : index
    %c0_0 = arith.constant 0 : index
    %0 = vector.load %arg1[%c0, %c0_0] : memref<128x128xf32, #tpu.memory_space<vmem>>, vector<128x128xf32>
    %c0_1 = arith.constant 0 : index
    %c0_2 = arith.constant 0 : index
    %1 = vector.load %arg2[%c0_1, %c0_2] : memref<128x128xf32, #tpu.memory_space<vmem>>, vector<128x128xf32>
    %cst = arith.constant dense<0.000000e+00> : vector<128x128xf32>
    %2 = tpu.matmul %0, %1, %cst {dimension_numbers = #tpu.dot_dimension_numbers<[1], [0], [0], [1], [0, 0, 1, 1], [], []>} : vector<128x128xf32>, vector<128x128xf32>, vector<128x128xf32> -> vector<128x128xf32>
    %c0_3 = arith.constant 0 : index
    %c0_4 = arith.constant 0 : index
    %3 = vector.load %arg5[%c0_3, %c0_4] : memref<128x128xf32, #tpu.memory_space<vmem>>, vector<128x128xf32>
    tpu.vector_store %arg5[%c0_3, %c0_4], %2 {strides = array<i32>} : memref<128x128xf32, #tpu.memory_space<vmem>>, vector<128x128xf32>,
    %c0_5 = arith.constant 0 : index
    %c0_6 = arith.constant 0 : index
    %4 = vector.load %arg4[%c0_5, %c0_6] : memref<1x128xf32, #tpu.memory_space<vmem>>, vector<1x128xf32>
    %5 = vector.broadcast %4 : vector<1x128xf32> to vector<128x128xf32>
    %6 = arith.mulf %2, %5 : vector<128x128xf32>
    %cst_7 = arith.constant dense<0.000000e+00> : vector<128xf32>
    %7 = vector.multi_reduction <add>, %6, %cst_7 [1] : vector<128x128xf32> to vector<128xf32>
    %8 = vector.shape_cast %7 : vector<128xf32> to vector<128x1xf32>
    %c0_8 = arith.constant 0 : index
    %c0_9 = arith.constant 0 : index
    %9 = vector.load %arg6[%c0_8, %c0_9] : memref<128x1xf32, #tpu.memory_space<vmem>>, vector<128x1xf32>
    tpu.vector_store %arg6[%c0_8, %c0_9], %8 {strides = array<i32>} : memref<128x1xf32, #tpu.memory_space<vmem>>, vector<128x1xf32>,
    %c0_10 = arith.constant 0 : index
    %c0_11 = arith.constant 0 : index
    %10 = vector.load %arg3[%c0_10, %c0_11] : memref<1x128xf32, #tpu.memory_space<vmem>>, vector<1x128xf32>
    %11 = vector.broadcast %10 : vector<1x128xf32> to vector<128x128xf32>
    %12 = arith.mulf %2, %11 : vector<128x128xf32>
    %cst_12 = arith.constant dense<0.000000e+00> : vector<128xf32>
    %13 = vector.multi_reduction <add>, %12, %cst_12 [1] : vector<128x128xf32> to vector<128xf32>
    %14 = vector.shape_cast %13 : vector<128xf32> to vector<128x1xf32>
    %15 = tpu.transpose %14, [1, 0] : vector<128x1xf32> -> vector<1x128xf32>
    %c0_13 = arith.constant 0 : index
    %c0_14 = arith.constant 0 : index
    %16 = vector.load %arg7[%c0_13, %c0_14] : memref<1x128xf32, #tpu.memory_space<vmem>>, vector<1x128xf32>
    tpu.vector_store %arg7[%c0_13, %c0_14], %15 {strides = array<i32>} : memref<1x128xf32, #tpu.memory_space<vmem>>, vector<1x128xf32>,
    return
  }
  func.func @transform_0(%arg0: i32) -> (i32, i32) {
    %c0_i32 = arith.constant 0 : i32
    %c0_i32_0 = arith.constant 0 : i32
    return %arg0, %c0_i32 : i32, i32
  }
  func.func @transform_1(%arg0: i32) -> (i32, i32) {
    %c0_i32 = arith.constant 0 : i32
    %c0_i32_0 = arith.constant 0 : i32
    %c0_i32_1 = arith.constant 0 : i32
    return %c0_i32, %c0_i32_0 : i32, i32
  }
  func.func @transform_2(%arg0: i32) -> (i32, i32) {
    %c0_i32 = arith.constant 0 : i32
    %c0_i32_0 = arith.constant 0 : i32
    %c0_i32_1 = arith.constant 0 : i32
    return %c0_i32, %c0_i32_0 : i32, i32
  }
  func.func @transform_3(%arg0: i32) -> (i32, i32) {
    %c0_i32 = arith.constant 0 : i32
    %c0_i32_0 = arith.constant 0 : i32
    %c0_i32_1 = arith.constant 0 : i32
    return %c0_i32, %c0_i32_0 : i32, i32
  }
  func.func @transform_4(%arg0: i32) -> (i32, i32) {
    %c0_i32 = arith.constant 0 : i32
    %c0_i32_0 = arith.constant 0 : i32
    return %arg0, %c0_i32 : i32, i32
  }
  func.func @transform_5(%arg0: i32) -> (i32, i32) {
    %c0_i32 = arith.constant 0 : i32
    %c0_i32_0 = arith.constant 0 : i32
    return %arg0, %c0_i32 : i32, i32
  }
  func.func @transform_6(%arg0: i32) -> (i32, i32) {
    %c0_i32 = arith.constant 0 : i32
    %c0_i32_0 = arith.constant 0 : i32
    return %c0_i32, %arg0 : i32, i32
  }
}

</mosaic_0001>

<bundles_post_ra>
// kernel: tpu_custom_call.1
= control target key start
LH: loop header
LB: loop body
LE: loop exit
PB: predicated region body
PF: predicated region fallthrough
CT: control target
= control target key end

     0   :  { %12 = vsyncpa [#allocation3], 0  ;;  %s697_s0 = inlined_call_operand.hbm [shape: f32[128,128], index: 0, kind: input, shape index: {}]   ;;  %s698_s1 = inlined_call_operand.hbm [shape: f32[128,128], index: 1, kind: input, shape index: {}]   ;;  %s699_s2 = inlined_call_operand.vmem [shape: f32[1,128], index: 2, kind: input, shape index: {}]   ;;  %s700_s3 = inlined_call_operand.vmem [shape: f32[1,128], index: 3, kind: input, shape index: {}]   ;;  %s701_s4 = inlined_call_operand.hbm [shape: f32[128,128], index: 4, kind: output, shape index: {0}]   ;;  %s702_s5 = inlined_call_operand.vmem [shape: f32[128,1], index: 5, kind: output, shape index: {1}]   ;;  %s703_s6 = inlined_call_operand.hbm [shape: f32[1,128], index: 6, kind: output, shape index: {2}]  }
   0x1   :  { %13 = vsyncpa [#allocation6], 0 }
   0x2   :  { %14 = vsyncpa [#allocation4], 0 }
   0x3   :  { %15 = vsyncpa [#allocation9], 0  ;;  %s20_s23 = sshll.u32 %s697_s0, 4  ;;  %s521_s24 = smov [#allocation2]   ;;  %s21_s23 = int_to_ptr.hbm [resolvable:$true] %s20_s23 }
   0x4   :  { %s22_s25 = sshll.u32 %s521_s24, 4  ;;  %s33_s28 = sshll.u32 %s698_s1, 4  ;;  %s23_s25 = int_to_ptr.vmem [resolvable:$true] %s22_s25  ;;  %s34_s28 = int_to_ptr.hbm [resolvable:$true] %s33_s28 }
   0x5   :  { %s522_s29 = smov 128   ;;  %s523_s30 = smov 8  }
   0x6   :  { %28 = dma.hbm_to_vmem [thread:$0]  %s21_s23, 2048, %s23_s25, [#allocation3], %s522_s29, %s522_s29, %s523_s30  }
   0x7   :  { %s524_s7 = smov [#allocation5]  }
   0x8   :  { %s35_s8 = sshll.u32 %s524_s7, 4  ;;  %s36_s8 = int_to_ptr.vmem [resolvable:$true] %s35_s8 }
   0x9   :  { %41 = dma.hbm_to_vmem [thread:$0]  %s34_s28, 2048, %s36_s8, [#allocation6], %s522_s29, %s522_s29, %s523_s30  }
   0xa   :  { %513 = dma.done.wait [#allocation3], 2048  }
   0xb   :  { %514 = vsyncadd [#allocation3], 4294965248 }
   0xc   :  { %515 = dma.done.wait [#allocation6], 2048  }
   0xd   :  { %516 = vsyncadd [#allocation6], 4294965248  ;;  %v85_v0 = vld [vmem:[#allocation5 + $0x78] sm:$0xff]  ;;  %v84_v1 = vld [vmem:[#allocation5 + $0x70] sm:$0xff]  ;;  %vm219_vm0 = vcmask 7168   ;;  %s525_s11 = smov [#allocation7]  }
   0xe   :  { %86 = vmatpush.msra.mxu0 %v85_v0  ;;  %361 = vmatpush.msra.mxu1 %v85_v0  ;;  %v83_v2 = vld [vmem:[#allocation5 + $0x68] sm:$0xff]  ;;  %v82_v3 = vld [vmem:[#allocation5 + $0x60] sm:$0xff]  ;;  %v81_v4 = vld [vmem:[#allocation5 + $0x58] sm:$0xff]  ;;  %s325_s12 = sshll.u32 %s525_s11, 4  ;;  %s327_s15 = sshll.u32 %s701_s4, 4  ;;  %s326_s12 = int_to_ptr.vmem [resolvable:$true] %s325_s12  ;;  %s328_s15 = int_to_ptr.hbm [resolvable:$true] %s327_s15 }
   0xf   :  { %363 = vmatpush.msra.mxu3 %v85_v0  ;;  %362 = vmatpush.msra.mxu2 %v85_v0  ;;  %v80_v5 = vld [vmem:[#allocation5 + $0x50] sm:$0xff]  ;;  %v79_v6 = vld [vmem:[#allocation5 + $0x48] sm:$0xff]  ;;  %v78_v7 = vld [vmem:[#allocation5 + $0x40] sm:$0xff]  ;;  %s526_s4 = smov [#allocation8]   ;;  %s343_s20 = sshll.u32 %s703_s6, 4  ;;  %s344_s20 = int_to_ptr.hbm [resolvable:$true] %s343_s20 }
  0x10   :  { %87 = vmatpush.msra.mxu0 %v84_v1  ;;  %364 = vmatpush.msra.mxu1 %v84_v1  ;;  %v77_v8 = vld [vmem:[#allocation5 + $0x38] sm:$0xff]  ;;  %v76_v9 = vld [vmem:[#allocation5 + $0x30] sm:$0xff]  ;;  %v75_v10 = vld [vmem:[#allocation5 + $0x28] sm:$0xff] }
  0x11   :  { %366 = vmatpush.msra.mxu3 %v84_v1  ;;  %365 = vmatpush.msra.mxu2 %v84_v1  ;;  %v74_v11 = vld [vmem:[#allocation5 + $0x20] sm:$0xff]  ;;  %v73_v12 = vld [vmem:[#allocation5 + $0x18] sm:$0xff]  ;;  %v72_v13 = vld [vmem:[#allocation5 + $0x10] sm:$0xff] }
  0x12   :  { %88 = vmatpush.msra.mxu0 %v83_v2  ;;  %367 = vmatpush.msra.mxu1 %v83_v2  ;;  %v71_v14 = vld [vmem:[#allocation5 + $0x8] sm:$0xff]  ;;  %v70_v15 = vld [vmem:[#allocation5] sm:$0xff]  ;;  %v56_v24 = vld [vmem:[#allocation2 + $0x10] sm:$0xff] }
  0x13   :  { %369 = vmatpush.msra.mxu3 %v83_v2  ;;  %368 = vmatpush.msra.mxu2 %v83_v2  ;;  %v54_v16 = vld [vmem:[#allocation2] sm:$0xff]  ;;  %v55_v20 = vld [vmem:[#allocation2 + $0x8] sm:$0xff]  ;;  %v68_v25 = vld [vmem:[#allocation2 + $0x70] sm:$0xff] }
  0x14   :  { %89 = vmatpush.msra.mxu0 %v82_v3  ;;  %370 = vmatpush.msra.mxu1 %v82_v3  ;;  %v58_v17 = vld [vmem:[#allocation2 + $0x20] sm:$0xff]  ;;  %v67_v21 = vld [vmem:[#allocation2 + $0x68] sm:$0xff]  ;;  %v60_v26 = vld [vmem:[#allocation2 + $0x30] sm:$0xff] }
  0x15   :  { %372 = vmatpush.msra.mxu3 %v82_v3  ;;  %371 = vmatpush.msra.mxu2 %v82_v3  ;;  %v66_v18 = vld [vmem:[#allocation2 + $0x60] sm:$0xff]  ;;  %v59_v22 = vld [vmem:[#allocation2 + $0x28] sm:$0xff]  ;;  %v64_v27 = vld [vmem:[#allocation2 + $0x50] sm:$0xff] }
  0x16   :  { %90 = vmatpush.msra.mxu0 %v81_v4  ;;  %373 = vmatpush.msra.mxu1 %v81_v4  ;;  %v62_v19 = vld [vmem:[#allocation2 + $0x40] sm:$0xff]  ;;  %v63_v23 = vld [vmem:[#allocation2 + $0x48] sm:$0xff]  ;;  %v57_v28 = vld [vmem:[#allocation2 + $0x18] sm:$0xff] }
  0x17   :  { %375 = vmatpush.msra.mxu3 %v81_v4  ;;  %374 = vmatpush.msra.mxu2 %v81_v4  ;;  %v61_v29 = vld [vmem:[#allocation2 + $0x38] sm:$0xff]  ;;  %v577_v32 = vld [vmem:[%s700_s3] ss:$0 sm:$0xff] }
  0x18   :  { %91 = vmatpush.msra.mxu0 %v80_v5  ;;  %376 = vmatpush.msra.mxu1 %v80_v5  ;;  %v69_v30 = vld [vmem:[#allocation2 + $0x78] sm:$0xff]  ;;  %v582_v33 = vld [vmem:[%s699_s2] ss:$0 sm:$0xff] }
  0x19   :  { %378 = vmatpush.msra.mxu3 %v80_v5  ;;  %377 = vmatpush.msra.mxu2 %v80_v5  ;;  %v65_v31 = vld [vmem:[#allocation2 + $0x58] sm:$0xff] }
  0x1a   :  { %92 = vmatpush.msra.mxu0 %v79_v6  ;;  %379 = vmatpush.msra.mxu1 %v79_v6 }
  0x1b   :  { %381 = vmatpush.msra.mxu3 %v79_v6  ;;  %380 = vmatpush.msra.mxu2 %v79_v6 }
  0x1c   :  { %93 = vmatpush.msra.mxu0 %v78_v7  ;;  %382 = vmatpush.msra.mxu1 %v78_v7 }
  0x1d   :  { %384 = vmatpush.msra.mxu3 %v78_v7  ;;  %383 = vmatpush.msra.mxu2 %v78_v7 }
  0x1e   :  { %94 = vmatpush.msra.mxu0 %v77_v8  ;;  %385 = vmatpush.msra.mxu1 %v77_v8 }
  0x1f   :  { %387 = vmatpush.msra.mxu3 %v77_v8  ;;  %386 = vmatpush.msra.mxu2 %v77_v8 }
  0x20   :  { %95 = vmatpush.msra.mxu0 %v76_v9  ;;  %388 = vmatpush.msra.mxu1 %v76_v9 }
  0x21   :  { %390 = vmatpush.msra.mxu3 %v76_v9  ;;  %389 = vmatpush.msra.mxu2 %v76_v9 }
  0x22   :  { %96 = vmatpush.msra.mxu0 %v75_v10  ;;  %391 = vmatpush.msra.mxu1 %v75_v10 }
  0x23   :  { %393 = vmatpush.msra.mxu3 %v75_v10  ;;  %392 = vmatpush.msra.mxu2 %v75_v10 }
  0x24   :  { %97 = vmatpush.msra.mxu0 %v74_v11  ;;  %394 = vmatpush.msra.mxu1 %v74_v11 }
  0x25   :  { %396 = vmatpush.msra.mxu3 %v74_v11  ;;  %395 = vmatpush.msra.mxu2 %v74_v11 }
  0x26   :  { %98 = vmatpush.msra.mxu0 %v73_v12  ;;  %397 = vmatpush.msra.mxu1 %v73_v12 }
  0x27   :  { %399 = vmatpush.msra.mxu3 %v73_v12  ;;  %398 = vmatpush.msra.mxu2 %v73_v12 }
  0x28   :  { %99 = vmatpush.msra.mxu0 %v72_v13  ;;  %400 = vmatpush.msra.mxu1 %v72_v13 }
  0x29   :  { %402 = vmatpush.msra.mxu3 %v72_v13  ;;  %401 = vmatpush.msra.mxu2 %v72_v13 }
  0x2a   :  { %100 = vmatpush.msra.mxu0 %v71_v14  ;;  %403 = vmatpush.msra.mxu1 %v71_v14 }
  0x2b   :  { %405 = vmatpush.msra.mxu3 %v71_v14  ;;  %404 = vmatpush.msra.mxu2 %v71_v14 }
  0x2c   :  { %101 = vmatpush.msra.mxu0 %v70_v15  ;;  %406 = vmatpush.msra.mxu1 %v70_v15 }
  0x2d   :  { %408 = vmatpush.msra.mxu3 %v70_v15  ;;  %102 = vmatmul.f32.vlgmr.msra.gmra.mxu0 %v54_v16 }
  0x2e   :  { %114 = vmatmul.f32.vlgmr.msra.gmra.mxu1 %v58_v17  ;;  %138 = vmatmul.f32.vlgmr.msra.gmra.mxu3 %v66_v18 }
  0x2f   :  { %407 = vmatpush.msra.mxu2 %v70_v15 }
  0x30   :  { %126 = vmatmul.f32.vlgmr.msra.gmra.mxu2 %v62_v19 }
  0x35   :  { %105 = vmatmul.f32.gmra.mxu0 %v55_v20 }
  0x36   :  { %141 = vmatmul.f32.gmra.mxu3 %v67_v21  ;;  %117 = vmatmul.f32.gmra.mxu1 %v59_v22 }
  0x38   :  { %129 = vmatmul.f32.gmra.mxu2 %v63_v23 }
  0x3d   :  { %108 = vmatmul.f32.gmra.mxu0 %v56_v24 }
  0x3e   :  { %144 = vmatmul.f32.gmra.mxu3 %v68_v25  ;;  %120 = vmatmul.f32.gmra.mxu1 %v60_v26 }
  0x40   :  { %132 = vmatmul.f32.gmra.mxu2 %v64_v27 }
  0x45   :  { %111 = vmatmul.f32.gmra.mxu0 %v57_v28 }
  0x46   :  { %123 = vmatmul.f32.gmra.mxu1 %v61_v29  ;;  %147 = vmatmul.f32.gmra.mxu3 %v69_v30 }
  0x48   :  { %135 = vmatmul.f32.gmra.mxu2 %v65_v31 }
  0xaa   :  { %v103_v34 = vpop.f32.mrf.mxu0 }
  0xab   :  { %151 = vst [vmem:[#allocation7] sm:$0xff] %v103_v34  ;;  %v115_v35 = vpop.f32.mrf.mxu1  ;;  %v171_v36 = vmul.f32 %v577_v32, %v103_v34  ;;  %v240_v37 = vmul.f32 %v582_v33, %v103_v34 }
  0xac   :  { %155 = vst [vmem:[#allocation7 + $0x20] sm:$0xff] %v115_v35  ;;  %v175_v38 = vmul.f32 %v577_v32, %v115_v35  ;;  %v244_v3 = vmul.f32 %v582_v33, %v115_v35 }
  0xad   :  { %187 = vadd.xlane.f32.xlu0 %v171_v36  ;;  %256 = vadd.xlane.f32.xlu1 %v240_v37 }
  0xae   :  { %195 = vadd.xlane.f32.xlu2 %v175_v38 }
  0xb1   :  { %v139_v39 = vpop.f32.mrf.mxu3 }
  0xb2   :  { %163 = vst [vmem:[#allocation7 + $0x60] sm:$0xff] %v139_v39  ;;  %v106_v40 = vpop.f32.mrf.mxu0  ;;  %v588_v41 = vmul.f32 %v582_v33, %v139_v39  ;;  %v183_v43 = vmul.f32 %v577_v32, %v139_v39 }
  0xb3   :  { %v127_v42 = vpop.f32.mrf.mxu2  ;;  %152 = vst [vmem:[#allocation7 + $0x8] sm:$0xff] %v106_v40  ;;  %v118_v44 = vpop.f32.mrf.mxu1  ;;  %v172_v50 = vmul.f32 %v577_v32, %v106_v40  ;;  %v241_v59 = vmul.f32 %v582_v33, %v106_v40 }
  0xb4   :  { %159 = vst [vmem:[#allocation7 + $0x40] sm:$0xff] %v127_v42  ;;  %v179_v45 = vmul.f32 %v577_v32, %v127_v42  ;;  %v176_v48 = vmul.f32 %v577_v32, %v118_v44  ;;  %v245_v5 = vmul.f32 %v582_v33, %v118_v44  ;;  %v248_v8 = vmul.f32 %v582_v33, %v127_v42 }
  0xb5   :  { %211 = vadd.xlane.f32.xlu0 %v183_v43  ;;  %156 = vst [vmem:[#allocation7 + $0x28] sm:$0xff] %v118_v44 }
  0xb6   :  { %203 = vadd.xlane.f32.xlu2 %v179_v45 }
  0xb9   :  { %v592_v46 = vpop.f32.mrf.mxu3 }
  0xba   :  { %164 = vst [vmem:[#allocation7 + $0x68] sm:$0xff] %v592_v46  ;;  %v184_v47 = vmul.f32 %v577_v32, %v592_v46  ;;  %v109_v49 = vpop.f32.mrf.mxu0  ;;  %v253_v15 = vmul.f32 %v582_v33, %v592_v46 }
  0xbb   :  { %153 = vst [vmem:[#allocation7 + $0x10] sm:$0xff] %v109_v49  ;;  %v130_v51 = vpop.f32.mrf.mxu2  ;;  %v121_v52 = vpop.f32.mrf.mxu1  ;;  %v173_v53 = vmul.f32 %v577_v32, %v109_v49  ;;  %v242_v2 = vmul.f32 %v582_v33, %v109_v49 }
  0xbc   :  { %213 = vadd.xlane.f32.xlu1 %v184_v47  ;;  %160 = vst [vmem:[#allocation7 + $0x48] sm:$0xff] %v130_v51  ;;  %v180_v56 = vmul.f32 %v577_v32, %v130_v51  ;;  %v177_v61 = vmul.f32 %v577_v32, %v121_v52  ;;  %v246_v11 = vmul.f32 %v582_v33, %v121_v52 }
  0xbd   :  { %189 = vadd.xlane.f32.xlu0 %v172_v50  ;;  %157 = vst [vmem:[#allocation7 + $0x30] sm:$0xff] %v121_v52  ;;  %v249_v14 = vmul.f32 %v582_v33, %v130_v51 }
  0xbe   :  { %197 = vadd.xlane.f32.xlu2 %v176_v48 }
  0xc1   :  { %v145_v54 = vpop.f32.mrf.mxu3 }
  0xc2   :  { %165 = vst [vmem:[#allocation7 + $0x70] sm:$0xff] %v145_v54  ;;  %v112_v55 = vpop.f32.mrf.mxu0  ;;  %v185_v63 = vmul.f32 %v577_v32, %v145_v54  ;;  %v254_v16 = vmul.f32 %v582_v33, %v145_v54 }
  0xc3   :  { %v133_v57 = vpop.f32.mrf.mxu2  ;;  %154 = vst [vmem:[#allocation7 + $0x18] sm:$0xff] %v112_v55  ;;  %v124_v58 = vpop.f32.mrf.mxu1  ;;  %v174_v1 = vmul.f32 %v577_v32, %v112_v55  ;;  %v243_v7 = vmul.f32 %v582_v33, %v112_v55 }
  0xc4   :  { %191 = vadd.xlane.f32.xlu1 %v173_v53  ;;  %161 = vst [vmem:[#allocation7 + $0x50] sm:$0xff] %v133_v57  ;;  %v181_v60 = vmul.f32 %v577_v32, %v133_v57  ;;  %v178_v4 = vmul.f32 %v577_v32, %v124_v58  ;;  %v250_v6 = vmul.f32 %v582_v33, %v133_v57 }
  0xc5   :  { %205 = vadd.xlane.f32.xlu0 %v180_v56  ;;  %158 = vst [vmem:[#allocation7 + $0x38] sm:$0xff] %v124_v58  ;;  %v247_v9 = vmul.f32 %v582_v33, %v124_v58 }
  0xc6   :  { %258 = vadd.xlane.f32.xlu2 %v241_v59 }
  0xc9   :  { %v148_v62 = vpop.f32.mrf.mxu3 }
  0xca   :  { %166 = vst [vmem:[#allocation7 + $0x78] sm:$0xff] %v148_v62  ;;  %v186_v10 = vmul.f32 %v577_v32, %v148_v62  ;;  %v255_v17 = vmul.f32 %v582_v33, %v148_v62 }
  0xcb   :  { %v136_v0 = vpop.f32.mrf.mxu2 }
  0xcc   :  { %207 = vadd.xlane.f32.xlu1 %v181_v60  ;;  %162 = vst [vmem:[#allocation7 + $0x58] sm:$0xff] %v136_v0  ;;  %v182_v12 = vmul.f32 %v577_v32, %v136_v0  ;;  %v251_v13 = vmul.f32 %v582_v33, %v136_v0 }
  0xcd   :  { %199 = vadd.xlane.f32.xlu0 %v177_v61  ;;  %333 = dma.vmem_to_hbm [thread:$0]  %s326_s12, 2048, %s328_s15, [#allocation4], %s522_s29, %s522_s29, %s523_s30  }
  0xce   :  { %215 = vadd.xlane.f32.xlu2 %v185_v63 }
  0xd4   :  { %193 = vadd.xlane.f32.xlu1 %v174_v1 }
  0xd5   :  { %260 = vadd.xlane.f32.xlu0 %v242_v2 }
  0xd6   :  { %264 = vadd.xlane.f32.xlu2 %v244_v3 }
  0xdc   :  { %201 = vadd.xlane.f32.xlu1 %v178_v4 }
  0xdd   :  { %266 = vadd.xlane.f32.xlu0 %v245_v5 }
  0xde   :  { %276 = vadd.xlane.f32.xlu2 %v250_v6 }
  0xe4   :  { %262 = vadd.xlane.f32.xlu1 %v243_v7 }
  0xe5   :  { %272 = vadd.xlane.f32.xlu0 %v248_v8 }
  0xe6   :  { %270 = vadd.xlane.f32.xlu2 %v247_v9 }
  0xec   :  { %268 = vadd.xlane.f32.xlu1 %v246_v11 }
  0xed   :  { %217 = vadd.xlane.f32.xlu0 %v186_v10 }
  0xee   :  { %209 = vadd.xlane.f32.xlu2 %v182_v12 }
  0xf4   :  { %274 = vadd.xlane.f32.xlu1 %v249_v14 }
  0xf5   :  { %278 = vadd.xlane.f32.xlu0 %v251_v13 }
  0xf6   :  { %282 = vadd.xlane.f32.xlu2 %v253_v15 }
  0xfc   :  { %280 = vadd.xlane.f32.xlu1 %v588_v41 }
  0xfd   :  { %284 = vadd.xlane.f32.xlu0 %v254_v16 }
 0x104   :  { %286 = vadd.xlane.f32.xlu1 %v255_v17 }
 0x120   :  { %v188_v18 = vpop.xlane.xlu0 %187  ;;  %v257_v19 = vpop.xlane.xlu1 %256 }
 0x121   :  { %v196_v20 = vpop.xlane.xlu2 %195  ;;  %220 = vst.msk [vmem:[%s702_s5] sm:$0xff] %vm219_vm0, %v188_v18  ;;  %288 = vxpose.xlu2.b32.start [1/16] (narrow) %v257_v19, 8 }
 0x122   :  { %224 = vst.msk [vmem:[%s702_s5 + $0x20] sm:$0xff] %vm219_vm0, %v196_v20 }
 0x128   :  { %v212_v21 = vpop.xlane.xlu0 %211 }
 0x129   :  { %v204_v22 = vpop.xlane.xlu2 %203  ;;  %232 = vst.msk [vmem:[%s702_s5 + $0x60] sm:$0xff] %vm219_vm0, %v212_v21 }
 0x12a   :  { %228 = vst.msk [vmem:[%s702_s5 + $0x40] sm:$0xff] %vm219_vm0, %v204_v22 }
 0x12f   :  { %v214_v23 = vpop.xlane.xlu1 %213 }
 0x130   :  { %233 = vst.msk [vmem:[%s702_s5 + $0x68] sm:$0xff] %vm219_vm0, %v214_v23  ;;  %v190_v24 = vpop.xlane.xlu0 %189 }
 0x131   :  { %v198_v25 = vpop.xlane.xlu2 %197  ;;  %221 = vst.msk [vmem:[%s702_s5 + $0x8] sm:$0xff] %vm219_vm0, %v190_v24 }
 0x132   :  { %225 = vst.msk [vmem:[%s702_s5 + $0x28] sm:$0xff] %vm219_vm0, %v198_v25 }
 0x137   :  { %v192_v26 = vpop.xlane.xlu1 %191 }
 0x138   :  { %222 = vst.msk [vmem:[%s702_s5 + $0x10] sm:$0xff] %vm219_vm0, %v192_v26  ;;  %v206_v27 = vpop.xlane.xlu0 %205 }
 0x139   :  { %v259_v28 = vpop.xlane.xlu2 %258  ;;  %229 = vst.msk [vmem:[%s702_s5 + $0x48] sm:$0xff] %vm219_vm0, %v206_v27 }
 0x13a   :  { %289 = vxpose.xlu2.b32.cont [2/16] (narrow) %v259_v28, 8 }
 0x13f   :  { %v208_v29 = vpop.xlane.xlu1 %207 }
 0x140   :  { %230 = vst.msk [vmem:[%s702_s5 + $0x50] sm:$0xff] %vm219_vm0, %v208_v29  ;;  %v200_v30 = vpop.xlane.xlu0 %199 }
 0x141   :  { %v216_v31 = vpop.xlane.xlu2 %215  ;;  %226 = vst.msk [vmem:[%s702_s5 + $0x30] sm:$0xff] %vm219_vm0, %v200_v30 }
 0x142   :  { %234 = vst.msk [vmem:[%s702_s5 + $0x70] sm:$0xff] %vm219_vm0, %v216_v31 }
 0x147   :  { %v194_v32 = vpop.xlane.xlu1 %193 }
 0x148   :  { %223 = vst.msk [vmem:[%s702_s5 + $0x18] sm:$0xff] %vm219_vm0, %v194_v32  ;;  %v261_v33 = vpop.xlane.xlu0 %260 }
 0x149   :  { %v265_v34 = vpop.xlane.xlu2 %264  ;;  %290 = vxpose.xlu2.b32.cont [3/16] (narrow) %v261_v33, 8 }
 0x14f   :  { %v202_v35 = vpop.xlane.xlu1 %201 }
 0x150   :  { %227 = vst.msk [vmem:[%s702_s5 + $0x38] sm:$0xff] %vm219_vm0, %v202_v35  ;;  %v267_v36 = vpop.xlane.xlu0 %266 }
 0x151   :  { %v277_v37 = vpop.xlane.xlu2 %276 }
 0x157   :  { %v263_v38 = vpop.xlane.xlu1 %262 }
 0x158   :  { %291 = vxpose.xlu2.b32.cont [4/16] (narrow) %v263_v38, 8  ;;  %v273_v39 = vpop.xlane.xlu0 %272 }
 0x159   :  { %v271_v40 = vpop.xlane.xlu2 %270 }
 0x15f   :  { %v269_v43 = vpop.xlane.xlu1 %268 }
 0x160   :  { %292 = vxpose.xlu2.b32.cont [5/16] (narrow) %v265_v34, 8  ;;  %v218_v41 = vpop.xlane.xlu0 %217 }
 0x161   :  { %v210_v42 = vpop.xlane.xlu2 %209  ;;  %235 = vst.msk [vmem:[%s702_s5 + $0x78] sm:$0xff] %vm219_vm0, %v218_v41 }
 0x162   :  { %231 = vst.msk [vmem:[%s702_s5 + $0x58] sm:$0xff] %vm219_vm0, %v210_v42  ;;  %s341_s5 = sshll.u32 %s526_s4, 4  ;;  %s342_s5 = int_to_ptr.vmem [resolvable:$true] %s341_s5 }
 0x167   :  { %v275_v44 = vpop.xlane.xlu1 %274 }
 0x168   :  { %293 = vxpose.xlu2.b32.cont [6/16] (narrow) %v267_v36, 8  ;;  %v279_v45 = vpop.xlane.xlu0 %278 }
 0x169   :  { %v283_v47 = vpop.xlane.xlu2 %282 }
 0x16f   :  { %v281_v46 = vpop.xlane.xlu1 %280 }
 0x170   :  { %294 = vxpose.xlu2.b32.cont [7/16] (narrow) %v269_v43, 8  ;;  %v285_v48 = vpop.xlane.xlu0 %284 }
 0x177   :  { %v287_v49 = vpop.xlane.xlu1 %286 }
 0x178   :  { %295 = vxpose.xlu2.b32.cont [8/16] (narrow) %v271_v40, 8 }
 0x180   :  { %296 = vxpose.xlu2.b32.cont [9/16] (narrow) %v273_v39, 8 }
 0x188   :  { %297 = vxpose.xlu2.b32.cont [10/16] (narrow) %v275_v44, 8 }
 0x190   :  { %298 = vxpose.xlu2.b32.cont [11/16] (narrow) %v277_v37, 8 }
 0x198   :  { %299 = vxpose.xlu2.b32.cont [12/16] (narrow) %v279_v45, 8 }
 0x1a0   :  { %300 = vxpose.xlu2.b32.cont [13/16] (narrow) %v281_v46, 8 }
 0x1a8   :  { %301 = vxpose.xlu2.b32.cont [14/16] (narrow) %v283_v47, 8 }
 0x1b0   :  { %302 = vxpose.xlu2.b32.cont [15/16] (narrow) %v285_v48, 8 }
 0x1b8   :  { %303 = vxpose.xlu2.b32.end [16/16] (narrow) %v287_v49, 8 }
 0x1d9   :  { %v304_v50 = vpop.trf.xlu2 }
 0x1da   :  { %320 = vst [vmem:[#allocation8] sm:$0x1] %v304_v50 }
 0x1db   :  { %346 = dma.vmem_to_hbm [thread:$0]  %s342_s5, 16, %s344_s20, [#allocation9]  }
 0x1dc   :  { %517 = dma.done.wait [#allocation4], 2048  }
 0x1dd   :  { %518 = vsyncadd [#allocation4], 4294965248 }
 0x1de   :  { %519 = dma.done.wait [#allocation9], 16  }
 0x1df   :  { %520 = vsyncadd [#allocation9], 4294967280 }
 0x1e0   :  { %357 = vsyncpa [#allocation3], 1 }
 0x1e1   :  { %358 = vsyncpa [#allocation6], 1 }
 0x1e2   :  { %359 = vsyncpa [#allocation4], 1 }
 0x1e3   :  { %360 = vsyncpa [#allocation9], 1 }

</bundles_post_ra>
